<compile_context>
chip_gen: v5e
topology: v5e:2x2
jax: 0.10.0
libtpu: 0.0.40
codegen_flags: <defaults>
</compile_context>

<pallas_src>
import jax
import jax.numpy as jnp
from jax.experimental import pallas as pl
from jax.experimental.pallas import tpu as pltpu


# ---------------------------------------------------------------------------
# Fused kernel: one grid step == one graph's full forward pass
# ---------------------------------------------------------------------------

def _fused_gcn_kernel(adj_ref, x_ref,
                      w1_ref, b1_ref, w2_ref, b2_ref, w3_ref, b3_ref,
                      watt_ref, wfc_ref, bfc_ref, wsc_ref, bsc_ref,
                      o_ref):
    f32 = jnp.float32
    adj = adj_ref[...]                     # (N, N)
    x = x_ref[...]                         # (N, F)
    n = adj.shape[0]

    def gcn(a, xin, w, b):
        xw = jnp.dot(xin, w, preferred_element_type=f32)
        axw = jnp.dot(a, xw, preferred_element_type=f32)
        return jnp.maximum(axw + b, 0.0)

    # Three GCN layers (dropout is identity in eval mode).
    h = gcn(adj, x, w1_ref[...], b1_ref[...])          # (N, 64)
    h = gcn(adj, h, w2_ref[...], b2_ref[...])          # (N, 32)
    h = gcn(adj, h, w3_ref[...], b3_ref[...])          # (N, 32)

    # Attention pooling — every reduction is routed through the MXU.
    hw = jnp.dot(h, watt_ref[...], preferred_element_type=f32)      # (N, D)
    mean_row = jnp.full((1, n), 1.0 / n, f32)
    ctx = jnp.dot(mean_row, hw, preferred_element_type=f32)         # (1, D)
    t = jnp.tanh(ctx)                                               # (1, D)
    # sigmoid(h @ t^T)^T as a (1,D)x(N,D)->(1,N) contraction on the MXU.
    s_row = jax.nn.sigmoid(
        jnp.einsum('od,nd->on', t, h, preferred_element_type=f32))  # (1, N)
    # (h^T @ s)^T as a (1,N)x(N,D) matmul.
    pooled = jnp.dot(s_row, h, preferred_element_type=f32)          # (1, D)

    # MLP head + numerically-stable log_softmax over classes.
    fc = jnp.maximum(
        jnp.dot(pooled, wfc_ref[...], preferred_element_type=f32) + bfc_ref[...],
        0.0)                                                        # (1, Bn)
    scores = (jnp.dot(fc, wsc_ref[...], preferred_element_type=f32)
              + bsc_ref[...])                                       # (1, C)
    m = jnp.max(scores, axis=-1, keepdims=True)
    e = jnp.exp(scores - m)
    lse = jnp.log(jnp.sum(e, axis=-1, keepdims=True)) + m
    o_ref[...] = scores - lse                                       # (1, C)


# ---------------------------------------------------------------------------
# Wrapper: one pallas_call over a batch of graphs
# ---------------------------------------------------------------------------

def gcn_cn_v4_forward(params, adj, features):
    """adj: (B, N, N), features: (B, N, F) -> log-probs (B, C)."""
    B, N, _ = adj.shape
    F = features.shape[-1]
    C = params["w_sc"].shape[1]
    f1 = params["w1"].shape[1]
    f2 = params["w2"].shape[1]
    f3 = params["w3"].shape[1]
    bn = params["w_fc"].shape[1]

    def resident(shape):
        # Weight/bias block == full array; constant index_map keeps it in VMEM
        # across grid steps (no re-DMA per graph).
        nd = len(shape)
        return pl.BlockSpec(shape, lambda b, _nd=nd: (0,) * _nd)

    in_specs = [
        pl.BlockSpec((None, N, N), lambda b: (b, 0, 0)),   # adj (per graph)
        pl.BlockSpec((None, N, F), lambda b: (b, 0, 0)),   # features (per graph)
        resident(params["w1"].shape), resident(params["b1"].shape),
        resident(params["w2"].shape), resident(params["b2"].shape),
        resident(params["w3"].shape), resident(params["b3"].shape),
        resident(params["w_att"].shape),
        resident(params["w_fc"].shape), resident(params["b_fc"].shape),
        resident(params["w_sc"].shape), resident(params["b_sc"].shape),
    ]
    out_specs = pl.BlockSpec((None, 1, C), lambda b: (b, 0, 0))

    flops_per_graph = 2 * (
        N * F * f1 + N * N * f1 +          # layer 1
        N * f1 * f2 + N * N * f2 +         # layer 2
        N * f2 * f3 + N * N * f3 +         # layer 3
        N * f3 * f3 + f3 + N * f3 +        # attention (hw, ctx, scores)
        N * f3 +                           # pooled
        f3 * bn + bn * C)                  # head
    bytes_accessed = 4 * (adj.size + features.size
                          + sum(int(p.size) for p in params.values())
                          + B * C)

    out = pl.pallas_call(
        _fused_gcn_kernel,
        out_shape=jax.ShapeDtypeStruct((B, 1, C), jnp.float32),
        grid_spec=pltpu.PrefetchScalarGridSpec(
            num_scalar_prefetch=0,
            grid=(B,),
            in_specs=in_specs,
            out_specs=out_specs,
        ),
        compiler_params=pltpu.CompilerParams(
            dimension_semantics=("parallel",)),
        cost_estimate=pl.CostEstimate(
            flops=B * flops_per_graph,
            transcendentals=B * (f3 + N + C + 1),
            bytes_accessed=bytes_accessed),
    )(adj, features,
      params["w1"], params["b1"], params["w2"], params["b2"],
      params["w3"], params["b3"], params["w_att"],
      params["w_fc"], params["b_fc"], params["w_sc"], params["b_sc"])
    return out[:, 0, :]                                             # (B, C)


gcn_cn_v4_forward_jit = jax.jit(gcn_cn_v4_forward)


# ---------------------------------------------------------------------------
# Pure-JAX reference (mirrors the PyTorch forward) for a correctness check
# ---------------------------------------------------------------------------

def _reference_forward(params, adj, features):
    def one(a, x):
        h = jax.nn.relu(a @ (x @ params["w1"]) + params["b1"])
        h = jax.nn.relu(a @ (h @ params["w2"]) + params["b2"])
        h = jax.nn.relu(a @ (h @ params["w3"]) + params["b3"])
        ctx = jnp.mean(h @ params["w_att"], axis=0)                 # (D,)
        t = jnp.tanh(ctx)
        s = jax.nn.sigmoid(h @ t[:, None])                          # (N, 1)
        pooled = (h.T @ s).T                                        # (1, D)
        fc = jax.nn.relu(pooled @ params["w_fc"] + params["b_fc"])
        scores = fc @ params["w_sc"] + params["b_sc"]
        return jax.nn.log_softmax(scores, axis=-1)[0]
    return jax.vmap(one)(adj, features)


# ---------------------------------------------------------------------------
# Parameter init (xavier_uniform for weights, matching the torch module dims)
# ---------------------------------------------------------------------------

def init_params(key, feature_dim_size, num_classes):
    f1, f2, f3, bn = 64, 32, 32, 32
    ks = jax.random.split(key, 8)

    def glorot(k, shape):
        scale = jnp.sqrt(6.0 / (shape[0] + shape[1]))
        return jax.random.uniform(k, shape, jnp.float32, -scale, scale)

    return {
        "w1": glorot(ks[0], (feature_dim_size, f1)), "b1": jnp.zeros((1, f1), jnp.float32),
        "w2": glorot(ks[1], (f1, f2)),               "b2": jnp.zeros((1, f2), jnp.float32),
        "w3": glorot(ks[2], (f2, f3)),               "b3": jnp.zeros((1, f3), jnp.float32),
        "w_att": glorot(ks[3], (f3, f3)),
        "w_fc": glorot(ks[4], (f3, bn)),
        "b_fc": 0.01 * jax.random.normal(ks[5], (1, bn), jnp.float32),
        "w_sc": glorot(ks[6], (bn, num_classes)),
        "b_sc": 0.01 * jax.random.normal(ks[7], (1, num_classes), jnp.float32),
    }


# ---------------------------------------------------------------------------
# Demo
# ---------------------------------------------------------------------------

if __name__ == "__main__":
    B = 4                  # graphs per batch (parallel grid axis)
    N = 16                 # nodes per graph
    FEATURE_DIM = 8        # feature_dim_size
    NUM_CLASSES = 4

    key = jax.random.PRNGKey(0)
    k_adj, k_feat, k_param = jax.random.split(key, 3)

    # Deterministic dense adjacency with self-loops, row-normalized, per graph.
    raw = (jax.random.uniform(k_adj, (B, N, N)) > 0.7).astype(jnp.float32)
    raw = jnp.maximum(raw, jnp.swapaxes(raw, 1, 2)) + jnp.eye(N, dtype=jnp.float32)
    adj = raw / jnp.sum(raw, axis=2, keepdims=True)

    features = jax.random.normal(k_feat, (B, N, FEATURE_DIM), jnp.float32)
    params = init_params(k_param, FEATURE_DIM, NUM_CLASSES)

    out = gcn_cn_v4_forward_jit(params, adj, features)
    jax.block_until_ready(out)

    ref = _reference_forward(params, adj, features)

    assert out.shape == (B, NUM_CLASSES)
    assert bool(jnp.all(jnp.isfinite(out)))
    # log_softmax rows should sum (in prob space) to 1
    assert bool(jnp.allclose(jnp.sum(jnp.exp(out), axis=1), 1.0, atol=1e-5))
    # matches the pure-JAX reference of the PyTorch forward
    assert bool(jnp.allclose(out, ref, rtol=1e-3, atol=1e-3))
    print("KERNEL_OK")
</pallas_src>

<mosaic_0001>
module attributes {stable_mosaic.version = 11 : i64} {
  func.func @_fused_gcn_kernel(%arg0: i32, %arg1: memref<1x16x16xf32, #tpu.memory_space<vmem>>, %arg2: memref<1x16x8xf32, #tpu.memory_space<vmem>>, %arg3: memref<8x64xf32, #tpu.memory_space<vmem>>, %arg4: memref<1x64xf32, #tpu.memory_space<vmem>>, %arg5: memref<64x32xf32, #tpu.memory_space<vmem>>, %arg6: memref<1x32xf32, #tpu.memory_space<vmem>>, %arg7: memref<32x32xf32, #tpu.memory_space<vmem>>, %arg8: memref<1x32xf32, #tpu.memory_space<vmem>>, %arg9: memref<32x32xf32, #tpu.memory_space<vmem>>, %arg10: memref<32x32xf32, #tpu.memory_space<vmem>>, %arg11: memref<1x32xf32, #tpu.memory_space<vmem>>, %arg12: memref<32x4xf32, #tpu.memory_space<vmem>>, %arg13: memref<1x4xf32, #tpu.memory_space<vmem>>, %arg14: memref<1x1x4xf32, #tpu.memory_space<vmem>>) attributes {dimension_semantics = [#tpu.dimension_semantics<parallel>], iteration_bounds = array<i64: 4>, scalar_prefetch = 0 : i64, scratch_operands = 0 : i64, tpu.core_type = #tpu.core_type<tc>, window_params = [{transform_indices = @transform_0, window_bounds = array<i64: 1, 16, 16>}, {transform_indices = @transform_1, window_bounds = array<i64: 1, 16, 8>}, {pipeline_mode = #tpu.pipeline_mode<synchronous>, transform_indices = @transform_2, window_bounds = array<i64: 8, 64>}, {pipeline_mode = #tpu.pipeline_mode<synchronous>, transform_indices = @transform_3, window_bounds = array<i64: 1, 64>}, {pipeline_mode = #tpu.pipeline_mode<synchronous>, transform_indices = @transform_4, window_bounds = array<i64: 64, 32>}, {pipeline_mode = #tpu.pipeline_mode<synchronous>, transform_indices = @transform_5, window_bounds = array<i64: 1, 32>}, {pipeline_mode = #tpu.pipeline_mode<synchronous>, transform_indices = @transform_6, window_bounds = array<i64: 32, 32>}, {pipeline_mode = #tpu.pipeline_mode<synchronous>, transform_indices = @transform_7, window_bounds = array<i64: 1, 32>}, {pipeline_mode = #tpu.pipeline_mode<synchronous>, transform_indices = @transform_8, window_bounds = array<i64: 32, 32>}, {pipeline_mode = #tpu.pipeline_mode<synchronous>, transform_indices = @transform_9, window_bounds = array<i64: 32, 32>}, {pipeline_mode = #tpu.pipeline_mode<synchronous>, transform_indices = @transform_10, window_bounds = array<i64: 1, 32>}, {pipeline_mode = #tpu.pipeline_mode<synchronous>, transform_indices = @transform_11, window_bounds = array<i64: 32, 4>}, {pipeline_mode = #tpu.pipeline_mode<synchronous>, transform_indices = @transform_12, window_bounds = array<i64: 1, 4>}, {transform_indices = @transform_13, window_bounds = array<i64: 1, 1, 4>}]} {
    %c0 = arith.constant 0 : index
    %c0_0 = arith.constant 0 : index
    %c0_1 = arith.constant 0 : index
    %0 = vector.load %arg1[%c0, %c0_0, %c0_1] : memref<1x16x16xf32, #tpu.memory_space<vmem>>, vector<1x16x16xf32>
    %1 = vector.shape_cast %0 : vector<1x16x16xf32> to vector<16x16xf32>
    %c0_2 = arith.constant 0 : index
    %c0_3 = arith.constant 0 : index
    %c0_4 = arith.constant 0 : index
    %2 = vector.load %arg2[%c0_2, %c0_3, %c0_4] : memref<1x16x8xf32, #tpu.memory_space<vmem>>, vector<1x16x8xf32>
    %3 = vector.shape_cast %2 : vector<1x16x8xf32> to vector<16x8xf32>
    %c0_5 = arith.constant 0 : index
    %c0_6 = arith.constant 0 : index
    %4 = vector.load %arg3[%c0_5, %c0_6] : memref<8x64xf32, #tpu.memory_space<vmem>>, vector<8x64xf32>
    %c0_7 = arith.constant 0 : index
    %c0_8 = arith.constant 0 : index
    %5 = vector.load %arg4[%c0_7, %c0_8] : memref<1x64xf32, #tpu.memory_space<vmem>>, vector<1x64xf32>
    %cst = arith.constant dense<0.000000e+00> : vector<16x64xf32>
    %6 = tpu.matmul %3, %4, %cst {dimension_numbers = #tpu.dot_dimension_numbers<[1], [0], [0], [1], [0, 0, 1, 1], [], []>} : vector<16x8xf32>, vector<8x64xf32>, vector<16x64xf32> -> vector<16x64xf32>
    %cst_9 = arith.constant dense<0.000000e+00> : vector<16x64xf32>
    %7 = tpu.matmul %1, %6, %cst_9 {dimension_numbers = #tpu.dot_dimension_numbers<[1], [0], [0], [1], [0, 0, 1, 1], [], []>} : vector<16x16xf32>, vector<16x64xf32>, vector<16x64xf32> -> vector<16x64xf32>
    %8 = vector.broadcast %5 : vector<1x64xf32> to vector<16x64xf32>
    %9 = arith.addf %7, %8 : vector<16x64xf32>
    %cst_10 = arith.constant 0.000000e+00 : f32
    %10 = vector.broadcast %cst_10 : f32 to vector<16x64xf32>
    %11 = arith.maximumf %9, %10 : vector<16x64xf32>
    %c0_11 = arith.constant 0 : index
    %c0_12 = arith.constant 0 : index
    %12 = vector.load %arg5[%c0_11, %c0_12] : memref<64x32xf32, #tpu.memory_space<vmem>>, vector<64x32xf32>
    %c0_13 = arith.constant 0 : index
    %c0_14 = arith.constant 0 : index
    %13 = vector.load %arg6[%c0_13, %c0_14] : memref<1x32xf32, #tpu.memory_space<vmem>>, vector<1x32xf32>
    %cst_15 = arith.constant dense<0.000000e+00> : vector<16x32xf32>
    %14 = tpu.matmul %11, %12, %cst_15 {dimension_numbers = #tpu.dot_dimension_numbers<[1], [0], [0], [1], [0, 0, 1, 1], [], []>} : vector<16x64xf32>, vector<64x32xf32>, vector<16x32xf32> -> vector<16x32xf32>
    %cst_16 = arith.constant dense<0.000000e+00> : vector<16x32xf32>
    %15 = tpu.matmul %1, %14, %cst_16 {dimension_numbers = #tpu.dot_dimension_numbers<[1], [0], [0], [1], [0, 0, 1, 1], [], []>} : vector<16x16xf32>, vector<16x32xf32>, vector<16x32xf32> -> vector<16x32xf32>
    %16 = vector.broadcast %13 : vector<1x32xf32> to vector<16x32xf32>
    %17 = arith.addf %15, %16 : vector<16x32xf32>
    %cst_17 = arith.constant 0.000000e+00 : f32
    %18 = vector.broadcast %cst_17 : f32 to vector<16x32xf32>
    %19 = arith.maximumf %17, %18 : vector<16x32xf32>
    %c0_18 = arith.constant 0 : index
    %c0_19 = arith.constant 0 : index
    %20 = vector.load %arg7[%c0_18, %c0_19] : memref<32x32xf32, #tpu.memory_space<vmem>>, vector<32x32xf32>
    %c0_20 = arith.constant 0 : index
    %c0_21 = arith.constant 0 : index
    %21 = vector.load %arg8[%c0_20, %c0_21] : memref<1x32xf32, #tpu.memory_space<vmem>>, vector<1x32xf32>
    %cst_22 = arith.constant dense<0.000000e+00> : vector<16x32xf32>
    %22 = tpu.matmul %19, %20, %cst_22 {dimension_numbers = #tpu.dot_dimension_numbers<[1], [0], [0], [1], [0, 0, 1, 1], [], []>} : vector<16x32xf32>, vector<32x32xf32>, vector<16x32xf32> -> vector<16x32xf32>
    %cst_23 = arith.constant dense<0.000000e+00> : vector<16x32xf32>
    %23 = tpu.matmul %1, %22, %cst_23 {dimension_numbers = #tpu.dot_dimension_numbers<[1], [0], [0], [1], [0, 0, 1, 1], [], []>} : vector<16x16xf32>, vector<16x32xf32>, vector<16x32xf32> -> vector<16x32xf32>
    %24 = vector.broadcast %21 : vector<1x32xf32> to vector<16x32xf32>
    %25 = arith.addf %23, %24 : vector<16x32xf32>
    %cst_24 = arith.constant 0.000000e+00 : f32
    %26 = vector.broadcast %cst_24 : f32 to vector<16x32xf32>
    %27 = arith.maximumf %25, %26 : vector<16x32xf32>
    %c0_25 = arith.constant 0 : index
    %c0_26 = arith.constant 0 : index
    %28 = vector.load %arg9[%c0_25, %c0_26] : memref<32x32xf32, #tpu.memory_space<vmem>>, vector<32x32xf32>
    %cst_27 = arith.constant dense<0.000000e+00> : vector<16x32xf32>
    %29 = tpu.matmul %27, %28, %cst_27 {dimension_numbers = #tpu.dot_dimension_numbers<[1], [0], [0], [1], [0, 0, 1, 1], [], []>} : vector<16x32xf32>, vector<32x32xf32>, vector<16x32xf32> -> vector<16x32xf32>
    %cst_28 = arith.constant 6.250000e-02 : f32
    %30 = vector.broadcast %cst_28 : f32 to vector<1x16xf32>
    %cst_29 = arith.constant dense<0.000000e+00> : vector<1x32xf32>
    %31 = tpu.matmul %30, %29, %cst_29 {dimension_numbers = #tpu.dot_dimension_numbers<[1], [0], [0], [1], [0, 0, 1, 1], [], []>} : vector<1x16xf32>, vector<16x32xf32>, vector<1x32xf32> -> vector<1x32xf32>
    %32 = math.tanh %31 : vector<1x32xf32>
    "tpu.trace_start"() <{level = 10 : i32, message = "od,nd->on"}> : () -> ()
    %cst_30 = arith.constant dense<0.000000e+00> : vector<1x16xf32>
    %33 = tpu.matmul %32, %27, %cst_30 {dimension_numbers = #tpu.dot_dimension_numbers<[1], [1], [0], [0], [0, 0, 1, 0], [], []>} : vector<1x32xf32>, vector<16x32xf32>, vector<1x16xf32> -> vector<1x16xf32>
    "tpu.trace_stop"() : () -> ()
    %34 = arith.negf %33 : vector<1x16xf32>
    %35 = math.exp %34 : vector<1x16xf32>
    %cst_31 = arith.constant 1.000000e+00 : f32
    %36 = vector.broadcast %cst_31 : f32 to vector<1x16xf32>
    %37 = arith.addf %36, %35 : vector<1x16xf32>
    %38 = arith.divf %36, %37 : vector<1x16xf32>
    %cst_32 = arith.constant dense<0.000000e+00> : vector<1x32xf32>
    %39 = tpu.matmul %38, %27, %cst_32 {dimension_numbers = #tpu.dot_dimension_numbers<[1], [0], [0], [1], [0, 0, 1, 1], [], []>} : vector<1x16xf32>, vector<16x32xf32>, vector<1x32xf32> -> vector<1x32xf32>
    %c0_33 = arith.constant 0 : index
    %c0_34 = arith.constant 0 : index
    %40 = vector.load %arg10[%c0_33, %c0_34] : memref<32x32xf32, #tpu.memory_space<vmem>>, vector<32x32xf32>
    %cst_35 = arith.constant dense<0.000000e+00> : vector<1x32xf32>
    %41 = tpu.matmul %39, %40, %cst_35 {dimension_numbers = #tpu.dot_dimension_numbers<[1], [0], [0], [1], [0, 0, 1, 1], [], []>} : vector<1x32xf32>, vector<32x32xf32>, vector<1x32xf32> -> vector<1x32xf32>
    %c0_36 = arith.constant 0 : index
    %c0_37 = arith.constant 0 : index
    %42 = vector.load %arg11[%c0_36, %c0_37] : memref<1x32xf32, #tpu.memory_space<vmem>>, vector<1x32xf32>
    %43 = arith.addf %41, %42 : vector<1x32xf32>
    %cst_38 = arith.constant 0.000000e+00 : f32
    %44 = vector.broadcast %cst_38 : f32 to vector<1x32xf32>
    %45 = arith.maximumf %43, %44 : vector<1x32xf32>
    %c0_39 = arith.constant 0 : index
    %c0_40 = arith.constant 0 : index
    %46 = vector.load %arg12[%c0_39, %c0_40] : memref<32x4xf32, #tpu.memory_space<vmem>>, vector<32x4xf32>
    %cst_41 = arith.constant dense<0.000000e+00> : vector<1x4xf32>
    %47 = tpu.matmul %45, %46, %cst_41 {dimension_numbers = #tpu.dot_dimension_numbers<[1], [0], [0], [1], [0, 0, 1, 1], [], []>} : vector<1x32xf32>, vector<32x4xf32>, vector<1x4xf32> -> vector<1x4xf32>
    %c0_42 = arith.constant 0 : index
    %c0_43 = arith.constant 0 : index
    %48 = vector.load %arg13[%c0_42, %c0_43] : memref<1x4xf32, #tpu.memory_space<vmem>>, vector<1x4xf32>
    %49 = arith.addf %47, %48 : vector<1x4xf32>
    %cst_44 = arith.constant dense<0xFF800000> : vector<1xf32>
    %50 = vector.multi_reduction <maximumf>, %49, %cst_44 [1] : vector<1x4xf32> to vector<1xf32>
    %51 = vector.shape_cast %50 : vector<1xf32> to vector<1x1xf32>
    %52 = vector.broadcast %51 : vector<1x1xf32> to vector<1x4xf32>
    %53 = arith.subf %49, %52 : vector<1x4xf32>
    %54 = math.exp %53 : vector<1x4xf32>
    %cst_45 = arith.constant dense<0.000000e+00> : vector<1xf32>
    %55 = vector.multi_reduction <add>, %54, %cst_45 [1] : vector<1x4xf32> to vector<1xf32>
    %56 = vector.shape_cast %55 : vector<1xf32> to vector<1x1xf32>
    %57 = math.log %56 : vector<1x1xf32>
    %58 = arith.addf %57, %51 : vector<1x1xf32>
    %59 = vector.broadcast %58 : vector<1x1xf32> to vector<1x4xf32>
    %60 = arith.subf %49, %59 : vector<1x4xf32>
    %c0_46 = arith.constant 0 : index
    %c0_47 = arith.constant 0 : index
    %c0_48 = arith.constant 0 : index
    %61 = vector.load %arg14[%c0_46, %c0_47, %c0_48] : memref<1x1x4xf32, #tpu.memory_space<vmem>>, vector<1x1x4xf32>
    %62 = vector.shape_cast %61 : vector<1x1x4xf32> to vector<1x4xf32>
    %63 = vector.shape_cast %60 : vector<1x4xf32> to vector<1x1x4xf32>
    tpu.vector_store %arg14[%c0_46, %c0_47, %c0_48], %63 {strides = array<i32>} : memref<1x1x4xf32, #tpu.memory_space<vmem>>, vector<1x1x4xf32>,
    return
  }
  func.func @transform_0(%arg0: i32) -> (i32, i32, i32) {
    %c0_i32 = arith.constant 0 : i32
    %c0_i32_0 = arith.constant 0 : i32
    %c0_i32_1 = arith.constant 0 : i32
    return %arg0, %c0_i32, %c0_i32_0 : i32, i32, i32
  }
  func.func @transform_1(%arg0: i32) -> (i32, i32, i32) {
    %c0_i32 = arith.constant 0 : i32
    %c0_i32_0 = arith.constant 0 : i32
    %c0_i32_1 = arith.constant 0 : i32
    return %arg0, %c0_i32, %c0_i32_0 : i32, i32, i32
  }
  func.func @transform_2(%arg0: i32) -> (i32, i32) {
    %c0_i32 = arith.constant 0 : i32
    %c0_i32_0 = arith.constant 0 : i32
    %c0_i32_1 = arith.constant 0 : i32
    return %c0_i32, %c0_i32_0 : i32, i32
  }
  func.func @transform_3(%arg0: i32) -> (i32, i32) {
    %c0_i32 = arith.constant 0 : i32
    %c0_i32_0 = arith.constant 0 : i32
    %c0_i32_1 = arith.constant 0 : i32
    return %c0_i32, %c0_i32_0 : i32, i32
  }
  func.func @transform_4(%arg0: i32) -> (i32, i32) {
    %c0_i32 = arith.constant 0 : i32
    %c0_i32_0 = arith.constant 0 : i32
    %c0_i32_1 = arith.constant 0 : i32
    return %c0_i32, %c0_i32_0 : i32, i32
  }
  func.func @transform_5(%arg0: i32) -> (i32, i32) {
    %c0_i32 = arith.constant 0 : i32
    %c0_i32_0 = arith.constant 0 : i32
    %c0_i32_1 = arith.constant 0 : i32
    return %c0_i32, %c0_i32_0 : i32, i32
  }
  func.func @transform_6(%arg0: i32) -> (i32, i32) {
    %c0_i32 = arith.constant 0 : i32
    %c0_i32_0 = arith.constant 0 : i32
    %c0_i32_1 = arith.constant 0 : i32
    return %c0_i32, %c0_i32_0 : i32, i32
  }
  func.func @transform_7(%arg0: i32) -> (i32, i32) {
    %c0_i32 = arith.constant 0 : i32
    %c0_i32_0 = arith.constant 0 : i32
    %c0_i32_1 = arith.constant 0 : i32
    return %c0_i32, %c0_i32_0 : i32, i32
  }
  func.func @transform_8(%arg0: i32) -> (i32, i32) {
    %c0_i32 = arith.constant 0 : i32
    %c0_i32_0 = arith.constant 0 : i32
    %c0_i32_1 = arith.constant 0 : i32
    return %c0_i32, %c0_i32_0 : i32, i32
  }
  func.func @transform_9(%arg0: i32) -> (i32, i32) {
    %c0_i32 = arith.constant 0 : i32
    %c0_i32_0 = arith.constant 0 : i32
    %c0_i32_1 = arith.constant 0 : i32
    return %c0_i32, %c0_i32_0 : i32, i32
  }
  func.func @transform_10(%arg0: i32) -> (i32, i32) {
    %c0_i32 = arith.constant 0 : i32
    %c0_i32_0 = arith.constant 0 : i32
    %c0_i32_1 = arith.constant 0 : i32
    return %c0_i32, %c0_i32_0 : i32, i32
  }
  func.func @transform_11(%arg0: i32) -> (i32, i32) {
    %c0_i32 = arith.constant 0 : i32
    %c0_i32_0 = arith.constant 0 : i32
    %c0_i32_1 = arith.constant 0 : i32
    return %c0_i32, %c0_i32_0 : i32, i32
  }
  func.func @transform_12(%arg0: i32) -> (i32, i32) {
    %c0_i32 = arith.constant 0 : i32
    %c0_i32_0 = arith.constant 0 : i32
    %c0_i32_1 = arith.constant 0 : i32
    return %c0_i32, %c0_i32_0 : i32, i32
  }
  func.func @transform_13(%arg0: i32) -> (i32, i32, i32) {
    %c0_i32 = arith.constant 0 : i32
    %c0_i32_0 = arith.constant 0 : i32
    %c0_i32_1 = arith.constant 0 : i32
    return %arg0, %c0_i32, %c0_i32_0 : i32, i32, i32
  }
}

</mosaic_0001>

<bundles_post_ra>
// kernel: gcn_cn_v4_forward.1
= control target key start
LH: loop header
LB: loop body
LE: loop exit
PB: predicated region body
PF: predicated region fallthrough
CT: control target
= control target key end

     0   :  { %s1741_s0 = inlined_call_operand.vmem [shape: f32[4,16,16], index: 0, kind: input, shape index: {}]   ;;  %s1742_s1 = inlined_call_operand.vmem [shape: f32[4,16,8], index: 1, kind: input, shape index: {}]   ;;  %s1743_s2 = inlined_call_operand.vmem [shape: f32[8,64], index: 2, kind: input, shape index: {}]   ;;  %s1744_s3 = inlined_call_operand.hbm [shape: f32[1,64], index: 3, kind: input, shape index: {}]   ;;  %s1745_s4 = inlined_call_operand.vmem [shape: f32[64,32], index: 4, kind: input, shape index: {}]   ;;  %s1746_s5 = inlined_call_operand.hbm [shape: f32[1,32], index: 5, kind: input, shape index: {}]   ;;  %s1747_s6 = inlined_call_operand.vmem [shape: f32[32,32], index: 6, kind: input, shape index: {}]   ;;  %s1748_s7 = inlined_call_operand.hbm [shape: f32[1,32], index: 7, kind: input, shape index: {}]   ;;  %s1749_s8 = inlined_call_operand.vmem [shape: f32[32,32], index: 8, kind: input, shape index: {}]   ;;  %s1750_s9 = inlined_call_operand.vmem [shape: f32[32,32], index: 9, kind: input, shape index: {}]   ;;  %s1751_s10 = inlined_call_operand.hbm [shape: f32[1,32], index: 10, kind: input, shape index: {}]   ;;  %s1752_s11 = inlined_call_operand.vmem [shape: f32[32,4], index: 11, kind: input, shape index: {}]   ;;  %s1753_s12 = inlined_call_operand.hbm [shape: f32[1,4], index: 12, kind: input, shape index: {}]   ;;  %s1754_s13 = inlined_call_operand.hbm [shape: f32[4,1,4], index: 13, kind: output, shape index: {}]  }
   0x1   :  { %1760 = sst [smem:[#allocation21_spill]] %s1744_s3 }
   0x2   :  { %1761 = sst [smem:[#allocation22_spill]] %s1746_s5 }
   0x3   :  { %1762 = sst [smem:[#allocation23_spill]] %s1751_s10 }
   0x4   :  { %18 = vsyncpa [#allocation3], 0 }
   0x5   :  { %19 = vsyncpa [#allocation6], 0 }
   0x6   :  { %20 = vsyncpa [#allocation9], 0 }
   0x7   :  { %21 = vsyncpa [#allocation4], 0 }
   0x8   :  { %23 = vsyncpa [#allocation4 + $0x1], 0  ;;  %s1506_s25 = smov 0   ;;  %s1508_s26 = smov 0  }
   0x9   :  { %s1510_s27 = smov 0   ;;  %s1512_s28 = smov 0  }
   0xa LB: > { %1763 = sst [smem:[#allocation16_spill]] %s1416_s25  ;;  %s1527_s29 = sadd.s32 4294967295, %s1428_s28   ;;  %s1428_s28 = sphi %s1512_s28, %s1777_s28   ;;  %s1424_s27 = sphi %s1510_s27, %s1779_s27   ;;  %s1420_s26 = sphi %s1508_s26, %s1781_s26   ;;  %s1416_s25 = sphi %s1506_s25, %s1780_s25  }
   0xb   : > { %1764 = sst [smem:[#allocation17_spill]] %s1424_s27  ;;  %s1056_s30 = sadd.s32 4294967294, %s1428_s28  }
   0xc   : > { %s1531_s14 = sadd.s32 1, %s1428_s28   ;;  %s319_s15 = sadd.s32 1, %s1424_s27 }
   0xd   : > { %1765 = sst [smem:[#allocation18_spill]] %s1531_s14  ;;  %s316_s16 = ssub.s32 %s1428_s28, %s1531_s14 }
   0xe   : > { %p329_p0 = scmp.ne.s32.totalorder %s1424_s27, %s1420_s26  ;;  %p317_p1 = scmp.eq.s32.totalorder %s316_s16, 0 }
   0xf   : > { %p330_p2 = scmp.eq.s32.totalorder %s1527_s29, 3  ;;  %p335_p3 = scmp.ne.s32.totalorder %s1420_s26, %s1416_s25 }
  0x10   : > { %p336_p4 = scmp.eq.s32.totalorder %s1056_s30, 3  ;;  %p1057_p7 = scmp.ge.s32.totalorder %s1428_s28, 1 }
  0x11   : > { %s1542_s17 = scalar_select %p317_p1, %s1424_s27, %s319_s15  }
  0x12   : > { %p1544_p5 = por %p330_p2, %p329_p0  ;;  %p1548_p6 = por %p336_p4, %p335_p3 }
  0x13   : > { %1766 = sst [smem:[#allocation19_spill]] %s1542_s17  ;;  %p343_p8 = scmp.lt.s32.totalorder %s1428_s28, 5 }
  0x14   : > { %s1768_s19 = scalar_select %p1548_p6, 1, 0 }
  0x15   : > { %p1142_p9 = scmp.eq.s32.totalorder %s1527_s29, 0  ;;  %p1555_p10 = pnand %p1057_p7, %p343_p8 }
  0x16   : > { %1769 = sst [smem:[#allocation20_spill]] %s1768_s19  ;;  %s1430_s24 = smov [#allocation5]  }
  0x17   : > { %s1771_s5 = sld [smem:[#allocation22_spill]]  ;;  %p1122_p11 = pneg %p1555_p10 }
  0x18   : > { %s375_s30 = sshll.u32 %s1430_s24, 4  ;;  %s1772_s10 = sld [smem:[#allocation23_spill]]  ;;  %s376_s30 = int_to_ptr.vmem [resolvable:$true] %s375_s30 }
  0x19   : > { %p1569_p12 = pnand %p1142_p9, %p1122_p11  ;;  %s1774_s3 = sld [smem:[#allocation21_spill]] }
  0x1a   : > { %s1431_s14 = smov [#allocation8]   ;;  %s1432_s19 = smov [#allocation2]  }
  0x1b   : > { %s408_s24 = sshll.u32 %s1431_s14, 4  ;;  %s360_s25 = sshll.u32 %s1432_s19, 4  ;;  %s409_s24 = int_to_ptr.vmem [resolvable:$true] %s408_s24  ;;  %s361_s25 = int_to_ptr.vmem [resolvable:$true] %s360_s25 }
  0x1c   : > { %s1433_s21 = smov [#allocation7]  }
  0x1d   : > { %s373_s23 = sshll.u32 %s1771_s5, 4  ;;  %s390_s22 = sshll.u32 %s1433_s21, 4  ;;  %s374_s23 = int_to_ptr.hbm [resolvable:$true] %s373_s23  ;;  %s391_s22 = int_to_ptr.vmem [resolvable:$true] %s390_s22 }
  0x1e   : > { %s406_s17 = sshll.u32 %s1772_s10, 4  ;;  %s388_s10 = sshll.u32 %s1748_s7, 4  ;;  %s407_s17 = int_to_ptr.hbm [resolvable:$true] %s406_s17  ;;  %s389_s10 = int_to_ptr.hbm [resolvable:$true] %s388_s10 }
  0x1f   : > { %s358_s5 = sshll.u32 %s1774_s3, 4  ;;  %s359_s5 = int_to_ptr.hbm [resolvable:$true] %s358_s5 }
  0x20   : > { %1128 = dma.hbm_to_vmem [thread:$0]  (!%p1569_p12), %s374_s23, 16, %s376_s30, [#allocation6]  }
  0x21   : > { %1134 = dma.hbm_to_vmem [thread:$0]  (!%p1569_p12), %s407_s17, 16, %s409_s24, [#allocation9]  }
  0x22   : > { %1125 = dma.hbm_to_vmem [thread:$0]  (!%p1569_p12), %s359_s5, 16, %s361_s25, [#allocation3]  }
  0x23   : > { %s421_s23 = sshll.u32 %s1753_s12, 4  ;;  %s1434_s17 = smov [#allocation10]   ;;  %s422_s23 = int_to_ptr.hbm [resolvable:$true] %s421_s23 }
  0x24   : > { %1131 = dma.hbm_to_vmem [thread:$0]  (!%p1569_p12), %s389_s10, 16, %s391_s22, [#allocation6]  }
  0x25   : > { %s423_s30 = sshll.u32 %s1434_s17, 4  ;;  %452 = sbr.rel (%p1555_p10) target bundleno = 1960 (0x7a8), region = 72  ;;  %s424_s30 = int_to_ptr.vmem [resolvable:$true] %s423_s30 }
  0x26   : > { %1137 = dma.hbm_to_vmem [thread:$0]  (!%p1569_p12), %s422_s23, 16, %s424_s30, [#allocation9]  }
  0x2a   : > { %1399 = dma.done.wait (%p1142_p9), [#allocation3], 16  }
  0x2b   : > { %1401 = vsyncadd (%p1142_p9), [#allocation3], 4294967280 }
  0x2c   : > { %1403 = dma.done.wait (%p1142_p9), [#allocation6], 32  }
  0x2d   : > { %1405 = vsyncadd (%p1142_p9), [#allocation6], 4294967264 }
  0x2e   : > { %1407 = dma.done.wait (%p1142_p9), [#allocation9], 32  }
  0x2f   : > { %1409 = vsyncadd (%p1142_p9), [#allocation9], 4294967264  ;;  %p521_p13 = scmp.lt.s32.totalorder %s1527_s29, 3  ;;  %vm537_vm0 = vcmask 64512   ;;  %v535_v0 = vld [vmem:[%s1743_s2] sm:$0xff]  ;;  %v609_v3 = vld [vmem:[%s1745_s4 + $0x38] sm:$0xff]  ;;  %s935_s23 = scalar_lea.hbm %s1754_s13, %s1527_s29 }
  0x30   : > { %559 = vmatpush.msra.mxu0 %v535_v0  ;;  %v608_v4 = vld [vmem:[%s1745_s4 + $0x30] sm:$0xff]  ;;  %626 = vmatpush.msra.mxu2 %v609_v3  ;;  %v607_v5 = vld [vmem:[%s1745_s4 + $0x28] sm:$0xff]  ;;  %v606_v6 = vld [vmem:[%s1745_s4 + $0x20] sm:$0xff]  ;;  %vm570_vm1 = vcmask 130048   ;;  %vm611_vm2 = vcmask 523264   ;;  %vm674_vm3 = vcmask 261120  }
  0x31   : > { %s522_s3 = scalar_select %p521_p13, %s1527_s29, 3  ;;  %v605_v7 = vld [vmem:[%s1745_s4 + $0x18] sm:$0xff]  ;;  %v604_v12 = vld [vmem:[%s1745_s4 + $0x10] sm:$0xff]  ;;  %v603_v13 = vld [vmem:[%s1745_s4 + $0x8] sm:$0xff]  ;;  %v1435_v50 = vmov 0.0625   ;;  %vm911_vm8 = vcmask 24576  }
  0x32   : > { %627 = vmatpush.msra.mxu2 %v608_v4  ;;  %v602_v14 = vld [vmem:[%s1745_s4] sm:$0xff]  ;;  %v672_v22 = vld [vmem:[%s1747_s6 + $0x18] sm:$0xff]  ;;  %v671_v25 = vld [vmem:[%s1747_s6 + $0x10] sm:$0xff]  ;;  %s519_s21 = sand.u32 1, %s1420_s26   ;;  %s1374_s20 = scalar_lea.hbm %s1754_s13, 4 }
  0x33   : > { %s1098_s5 = sshll.u32 %s522_s3, 4  ;;  %v1191_v15 = vld [vmem:[#allocation2] ss:$0 sm:$0xff]  ;;  %693 = vmatpush.msrb.mxu0 %v672_v22  ;;  %v670_v26 = vld [vmem:[%s1747_s6 + $0x8] sm:$0xff]  ;;  %v1192_v28 = vld [vmem:[#allocation5] ss:$0 sm:$0xff] }
  0x34   : > { %s530_s27 = scalar_lea.vmem %s1742_s1, %s1098_s5  ;;  %628 = vmatpush.msra.mxu2 %v607_v5  ;;  %v669_v27 = vld [vmem:[%s1747_s6] sm:$0xff]  ;;  %v735_v35 = vld [vmem:[%s1749_s8 + $0x18] sm:$0xff]  ;;  %v734_v38 = vld [vmem:[%s1749_s8 + $0x10] sm:$0xff]  ;;  %s520_s17 = scalar_lea.vmem [#allocation11], %s519_s21 }
  0x35   : > { %v533_v1 = vld [vmem:[%s530_s27] sm:$0xff]  ;;  %v534_v2 = vld [vmem:[%s530_s27 + $0x8] sm:$0xff]  ;;  %s525_s27 = scalar_lea.vmem %s1741_s0, %s1098_s5  ;;  %694 = vmatpush.msrb.mxu0 %v671_v25  ;;  %v857_v53 = vld [vmem:[%s1750_s9 + $0x18] sm:$0xff]  ;;  %s937_s30 = sshll.u32 %s520_s17, 4  ;;  %s938_s30 = int_to_ptr.vmem [resolvable:$true] %s937_s30 }
  0x36   : > { %1074 = vmatmul.msk.f32.vlgmr.msra.gmra.mxu0 %vm537_vm0, %v533_v1  ;;  %629 = vmatpush.msra.mxu2 %v606_v6  ;;  %v531_v10 = vld [vmem:[%s525_s27] sm:$0xff]  ;;  %v532_v11 = vld [vmem:[%s525_s27 + $0x8] sm:$0xff]  ;;  %v856_v54 = vld [vmem:[%s1750_s9 + $0x10] sm:$0xff]  ;;  %s939_s3 = sshll.u32 %s935_s23, 4  ;;  %s927_s10 = scalar_lea.sflag [#allocation4], %s519_s21  ;;  %s940_s3 = int_to_ptr.hbm [resolvable:$true] %s939_s3 }
  0x37   : > { %695 = vmatpush.msrb.mxu0 %v670_v26  ;;  %v733_v39 = vld [vmem:[%s1749_s8 + $0x8] sm:$0xff]  ;;  %v732_v40 = vld [vmem:[%s1749_s8] sm:$0xff]  ;;  %s1368_s25 = sshra.s32 %s940_s3, 4  ;;  %s1369_s25 = int_to_ptr.hbm [resolvable:$true] %s1368_s25 }
  0x38   : > { %630 = vmatpush.msra.mxu2 %v605_v7  ;;  %v1193_v41 = vld [vmem:[#allocation7] ss:$0 sm:$0xff]  ;;  %v855_v55 = vld [vmem:[%s1750_s9 + $0x8] sm:$0xff]  ;;  %v886_v7 = vld [vmem:[%s1752_s11 + $0x18] sm:$0xff]  ;;  %s1370_s27 = scalar_lea.hbm %s1369_s25, 1  ;;  %p1375_p3 = scmp.lt.s32.totalorder %s1369_s25, %s1754_s13 }
  0x39   : > { %696 = vmatpush.msrb.mxu0 %v669_v27  ;;  %v854_v6 = vld [vmem:[%s1750_s9] sm:$0xff]  ;;  %p1371_p0 = scmp.ne.s32.totalorder %s1369_s25, %s1370_s27  ;;  %p1376_p4 = scmp.lt.s32.totalorder %s1374_s20, %s1370_s27 }
  0x3a   : > { %631 = vmatpush.msra.mxu2 %v604_v12  ;;  %v858_v12 = vld [vmem:[#allocation8] sm:$0x1] }
  0x3b   : > { %p1372_p1 = pnand %p1371_p0, %p1544_p5  ;;  %p1377_p7 = por %p1376_p4, %p1375_p3 }
  0x3c   : > { %632 = vmatpush.msra.mxu2 %v603_v13 }
  0x3d   : > { %p1373_p2 = pneg %p1372_p1 }
  0x3e   : > { %1075 = vmatmul.msk.f32.gmra.mxu0 %vm537_vm0, %v534_v2  ;;  %633 = vmatpush.msra.mxu2 %v602_v14 }
  0x3f   : > { %p1378_p8 = pnand %p1377_p7, %p1373_p2 }
  0xb3   : > { %v561_v8 = vpop.f32.mrf.mxu0 }
  0xbb   : > { %v564_v9 = vpop.f32.mrf.mxu0 }
  0xbc   : > { %591 = vmatpush.msra.mxu1 %v564_v9  ;;  %v885_v9 = vld [vmem:[%s1752_s11 + $0x10] sm:$0xff] }
  0xbe   : > { %592 = vmatpush.msra.mxu1 %v561_v8 }
  0xbf   : > { %1076 = vmatmul.msk.f32.vlgmr.msra.gmra.mxu1 %vm570_vm1, %v531_v10 }
  0xc7   : > { %1077 = vmatmul.msk.f32.gmra.mxu1 %vm570_vm1, %v532_v11 }
 0x13c   : > { %v594_v16 = vpop.f32.mrf.mxu1 }
 0x13d   : > { %v595_v17 = vadd.f32 %v1191_v15, %v594_v16  ;;  %v887_v16 = vld [vmem:[#allocation10] sm:$0x1] }
 0x13f   : > { %v600_v18 = vmax.f32 %v595_v17, 0.0 }
 0x141   : > { %1078 = vmatmul.msk.f32.vlgmr.msra.gmra.mxu2 %vm611_vm2, %v600_v18 }
 0x144   : > { %v597_v19 = vpop.f32.mrf.mxu1 }
 0x145   : > { %v598_v20 = vadd.f32 %v1191_v15, %v597_v19 }
 0x147   : > { %v601_v21 = vmax.f32 %v598_v20, 0.0 }
 0x149   : > { %1079 = vmatmul.msk.f32.gmra.mxu2 %vm611_vm2, %v601_v21 }
 0x1c4   : > { %v635_v23 = vpop.f32.mrf.mxu2 }
 0x1cc   : > { %v638_v24 = vpop.f32.mrf.mxu2 }
 0x1cd   : > { %658 = vmatpush.msra.mxu3 %v638_v24 }
 0x1cf   : > { %659 = vmatpush.msra.mxu3 %v635_v23 }
 0x1d0   : > { %1080 = vmatmul.msk.f32.vlgmr.msra.gmra.mxu3 %vm570_vm1, %v531_v10 }
 0x1d1   : > { %754 = vmatpush.msrb.mxu3 %v735_v35 }
 0x1d3   : > { %755 = vmatpush.msrb.mxu3 %v734_v38 }
 0x1d5   : > { %756 = vmatpush.msrb.mxu3 %v733_v39 }
 0x1d7   : > { %757 = vmatpush.msrb.mxu3 %v732_v40 }
 0x1d8   : > { %1081 = vmatmul.msk.f32.gmra.mxu3 %vm570_vm1, %v532_v11 }
 0x1d9   : > { %874 = vmatpush.msra.mxu3 %v857_v53 }
 0x1db   : > { %875 = vmatpush.msra.mxu3 %v856_v54 }
 0x1dd   : > { %876 = vmatpush.msra.mxu3 %v855_v55 }
 0x1df   : > { %877 = vmatpush.msra.mxu3 %v854_v6 }
 0x253   : > { %v661_v29 = vpop.f32.mrf.mxu3 }
 0x254   : > { %v662_v30 = vadd.f32 %v1192_v28, %v661_v29 }
 0x256   : > { %v667_v31 = vmax.f32 %v662_v30, 0.0 }
 0x258   : > { %1082 = vmatmul.msk.f32.vlgmr.msrb.gmra.mxu0 %vm674_vm3, %v667_v31 }
 0x25b   : > { %v664_v32 = vpop.f32.mrf.mxu3 }
 0x25c   : > { %v665_v33 = vadd.f32 %v1192_v28, %v664_v32 }
 0x25e   : > { %v668_v34 = vmax.f32 %v665_v33, 0.0 }
 0x260   : > { %1083 = vmatmul.msk.f32.gmra.mxu0 %vm674_vm3, %v668_v34 }
 0x2d5   : > { %v698_v36 = vpop.f32.mrf.mxu0 }
 0x2dd   : > { %v701_v37 = vpop.f32.mrf.mxu0 }
 0x2de   : > { %721 = vmatpush.msrb.mxu1 %v701_v37 }
 0x2e0   : > { %722 = vmatpush.msrb.mxu1 %v698_v36 }
 0x2e1   : > { %1084 = vmatmul.msk.f32.vlgmr.msrb.gmra.mxu1 %vm570_vm1, %v531_v10  ;;  %v884_v10 = vld [vmem:[%s1752_s11 + $0x8] sm:$0xff] }
 0x2e9   : > { %1085 = vmatmul.msk.f32.gmra.mxu1 %vm570_vm1, %v532_v11  ;;  %v883_v11 = vld [vmem:[%s1752_s11] sm:$0xff] }
 0x35e   : > { %v724_v42 = vpop.f32.mrf.mxu1 }
 0x35f   : > { %v725_v43 = vadd.f32 %v1193_v41, %v724_v42 }
 0x361   : > { %v730_v44 = vmax.f32 %v725_v43, 0.0 }
 0x363   : > { %1086 = vmatmul.msk.f32.vlgmr.msrb.gmra.mxu3 %vm674_vm3, %v730_v44 }
 0x366   : > { %v727_v45 = vpop.f32.mrf.mxu1 }
 0x367   : > { %v728_v46 = vadd.f32 %v1193_v41, %v727_v45 }
 0x369   : > { %v731_v47 = vmax.f32 %v728_v46, 0.0 }
 0x36b   : > { %1087 = vmatmul.msk.f32.gmra.mxu3 %vm674_vm3, %v731_v47  ;;  %1089 = vmatpush.xpose.msk.msra.mxu0 %vm674_vm3, %v731_v47 }
 0x36c   : > { %848 = vmatpush.msra.mxu1 %v731_v47 }
 0x36e   : > { %849 = vmatpush.msra.mxu1 %v730_v44 }
 0x36f   : > { %1090 = vmatpush.xpose.msk.msra.mxu0 %vm674_vm3, %v730_v44 }
 0x3e6   : > { %v759_v48 = vpop.f32.mrf.mxu3 }
 0x3ee   : > { %v762_v49 = vpop.f32.mrf.mxu3 }
 0x3ef   : > { %782 = vmatpush.msrb.mxu2 %v762_v49 }
 0x3f1   : > { %783 = vmatpush.msrb.mxu2 %v759_v48 }
 0x3f2   : > { %1088 = vmatmul.msk.f32.vlgmr.msrb.gmra.mxu2 %vm570_vm1, %v1435_v50 }
 0x3f3   : > { %903 = vmatpush.msra.mxu2 %v886_v7 }
 0x3f5   : > { %904 = vmatpush.msra.mxu2 %v885_v9 }
 0x3f7   : > { %905 = vmatpush.msra.mxu2 %v884_v10 }
 0x3f9   : > { %906 = vmatpush.msra.mxu2 %v883_v11 }
 0x475   : > { %v785_v51 = vpop.f32.mrf.mxu2 }
 0x476   : > { %1194 = vtanh.f32 %v785_v51 }
 0x47c   : > { %v1195_v52 = vpop.eup %1194 }
 0x47d   : > { %1091 = vmatmul.msk.f32.vlgmr.msra.gmra.mxu0 %vm674_vm3, %v1195_v52 }
 0x4fa   : > { %v809_v56 = vpop.f32.mrf.mxu0 }
 0x4fb   : > { %v1092_v57 = vmul.f32 -1.442695, %v809_v56 }
 0x4fd   : > { %1196 = vpow2.f32 %v1092_v57 }
 0x503   : > { %v1197_v58 = vpop.eup %1196 }
 0x504   : > { %v815_v59 = vadd.f32 1.0, %v1197_v58 }
 0x506   : > { %1198 = vrcp.f32 %v815_v59  ;;  %v827_v63 = vand.u32 2147483648, %v815_v59  ;;  %v825_v1 = vand.u32 2147483647, %v815_v59  ;;  %vm821_vm5 = vweird.f32 %v815_v59 }
 0x508   : > { %v828_v3 = vor.u32 1.1754944e-38, %v827_v63  ;;  %vm826_vm7 = vcmp.eq.f32.partialorder %v825_v1, 8.507059e+37 }
 0x50c   : > { %v1199_v60 = vpop.eup %1198 }
 0x50d   : > { %v817_v61 = vmul.f32 %v1199_v60, %v815_v59  ;;  %vm822_vm4 = vweird.f32 %v1199_v60 }
 0x50e   : > { %vm823_vm6 = vmor %vm821_vm5, %vm822_vm4 }
 0x50f   : > { %v818_v62 = vsub.f32 1.0, %v817_v61 }
 0x511   : > { %v819_v0 = vmul.f32 %v1199_v60, %v818_v62 }
 0x513   : > { %v820_v2 = vadd.f32 %v1199_v60, %v819_v0 }
 0x515   : > { %v824_v4 = vsel %vm823_vm6, %v1199_v60, %v820_v2 }
 0x516   : > { %v829_v5 = vsel %vm826_vm7, %v828_v3, %v824_v4 }
 0x517   : > { %1093 = vmatmul.msk.f32.vlgmr.msra.gmra.mxu1 %vm570_vm1, %v829_v5 }
 0x594   : > { %v851_v8 = vpop.f32.mrf.mxu1 }
 0x595   : > { %1094 = vmatmul.msk.f32.vlgmr.msra.gmra.mxu3 %vm674_vm3, %v851_v8 }
 0x618   : > { %v879_v13 = vpop.f32.mrf.mxu3 }
 0x619   : > { %v880_v14 = vadd.f32 %v879_v13, %v858_v12 }
 0x61b   : > { %v882_v15 = vmax.f32 %v880_v14, 0.0 }
 0x61d   : > { %1095 = vmatmul.msk.f32.vlgmr.msra.gmra.mxu2 %vm674_vm3, %v882_v15 }
 0x6a0   : > { %v908_v17 = vpop.f32.mrf.mxu2 }
 0x6a1   : > { %v909_v18 = vadd.f32 %v908_v17, %v887_v16 }
 0x6a3   : > { %v912_v19 = vsel %vm911_vm8, %v909_v18, -inf }
 0x6a4   : > { %913 = vmax.xlane.f32.xlu0 %v912_v19 }
 0x717   : > { %v914_v20 = vpop.xlane.xlu0 %913 }
 0x718   : > { %v915_v21 = vsub.f32 %v909_v18, %v914_v20 }
 0x71a   : > { %v916_v22 = vmul.f32 1.442695, %v915_v21 }
 0x71c   : > { %1200 = vpow2.f32 %v916_v22 }
 0x722   : > { %v1201_v23 = vpop.eup %1200 }
 0x723   : > { %v918_v24 = vsel %vm911_vm8, %v1201_v23, 0.0 }
 0x724   : > { %919 = vadd.xlane.f32.xlu0 %v918_v24 }
 0x797   : > { %v920_v25 = vpop.xlane.xlu0 %919 }
 0x798   : > { %1202 = vlog2.f32 %v920_v25 }
 0x79e   : > { %v1203_v26 = vpop.eup %1202 }
 0x79f   : > { %v922_v27 = vmul.f32 0.6931472, %v1203_v26 }
 0x7a1   : > { %v923_v28 = vadd.f32 %v922_v27, %v914_v20 }
 0x7a3   : > { %v924_v29 = vsub.f32 %v909_v18, %v923_v28 }
 0x7a5   : > { %925 = vst.msk [vmem:[%s520_s17] sm:$0x1] %vm911_vm8, %v924_v29 }
 0x7a6   : > { %1381 = shalt.err (!%p1378_p8)
}
 0x7a7   : > { %1120 = dma.vmem_to_hbm [thread:$0]  (%p1544_p5), %s938_s30, 16, %s940_s3, %s927_s10  }
 0x7a8 PF: > { %s1775_s5 = sld [smem:[#allocation16_spill]]  ;;  %p1152_p9 = scmp.ge.s32.totalorder %s1428_s28, 2 }
 0x7aa   : > { %p1139_p10 = pnand %p1152_p9, %p1548_p6 }
 0x7ac   : > { %p1140_p11 = pneg %p1139_p10 }
 0x7ae   : > { %s951_s21 = sand.u32 1, %s1775_s5  }
 0x7af   : > { %s952_s22 = scalar_lea.sflag [#allocation4], %s951_s21 }
 0x7b0   : > { %1411 = dma.done.wait (%p1140_p11), %s952_s22, 16  }
 0x7b1   : > { %1413 = vsyncadd (%p1140_p11), %s952_s22, 4294967280  ;;  %s1777_s28 = sld [smem:[#allocation18_spill]]  ;;  %s1780_s25 = smov %s1420_s26 }
 0x7b2   : > { %s1778_s14 = sld [smem:[#allocation17_spill]] }
 0x7b3   : > { %s1779_s27 = sld [smem:[#allocation19_spill]] }
 0x7b7   : > { %p26_p12 = scmp.ge.s32.totalorder %s1777_s28, 6  }
 0x7b8   : > { %s1781_s26 = smov %s1778_s14 }
 0x7b9   :  { %28 = sbr.rel (!%p26_p12) target bundleno = 10 (0xa), region = 131 }
 0x7be   :  { %957 = vsyncpa [#allocation3], 1 }
 0x7bf   :  { %959 = vsyncpa [#allocation3 + $0x1], 1 }
 0x7c0   :  { %960 = vsyncpa [#allocation6], 1 }
 0x7c1   :  { %961 = vsyncpa [#allocation9], 1 }
 0x7c2   :  { %962 = vsyncpa [#allocation4], 1 }
 0x7c3   :  { %964 = vsyncpa [#allocation4 + $0x1], 1 }

</bundles_post_ra>
